<compile_context>
chip_gen: v6e
topology: v6e:2x2x1
jax: 0.10.0
libtpu: 0.0.40
codegen_flags: <defaults>
</compile_context>

<pallas_src>
import functools

import jax
import jax.numpy as jnp
from jax.experimental import pallas as pl
from jax.experimental.pallas import tpu as pltpu


def _relu_gconv3x3_kernel(x_ref, w_ref, o_ref):
    # x_ref: (1, N, H+2, W+2, Cg)  zero-padded f32 input for this group
    #        (block index depends only on the group axis -> stays resident
    #         across the row-tile grid axis).
    # w_ref: (1, 3, 3*Cg_in, Cg_out) bf16 weights: one (3*Cg_in, Cg_out) matrix per kh tap.
    # o_ref: (1, N, TH, W, Cg_out)  f32 output row-tile.
    _, n, hp, wp, cg = x_ref.shape
    _, _, th, w, co = o_ref.shape
    j = pl.program_id(1)                      # row-tile index within the group

    # Rows [j*TH, j*TH + TH + 2) of the padded input feed this output tile.
    xs = x_ref[0, :, pl.ds(j * th, th + 2), :, :]           # (n, th+2, wp, cg) f32
    # ReLU in f32 (padding is zeros, ReLU(0)=0), then bf16 for the MXU.
    xs = jnp.maximum(xs, 0.0).astype(jnp.bfloat16)

    # W-axis im2col built once: lanes become 3*Cg, so each kh tap is ONE matmul.
    xcol = jnp.concatenate(
        [xs[:, :, kw:kw + w, :] for kw in range(3)], axis=-1)  # (n, th+2, w, 3*cg)

    acc = jnp.zeros((n * th * w, co), jnp.float32)
    for kh in range(3):                                        # static, unrolled
        patch = xcol[:, kh:kh + th, :, :].reshape(n * th * w, 3 * cg)
        acc = acc + jnp.dot(patch, w_ref[0, kh],
                            preferred_element_type=jnp.float32)

    o_ref[0] = acc.reshape(n, th, w, co).astype(o_ref.dtype)


def _pick_row_tile(h, target=14):
    """Largest divisor of h that is <= target (falls back to h itself)."""
    for t in range(min(h, target), 0, -1):
        if h % t == 0:
            return t if t > 1 else h
    return h


def relu_grouped_conv3x3(x_nchw, w_oihw, groups):
    """ReLU followed by grouped 3x3 conv (stride 1, pad 1, no bias). NCHW in/out."""
    N, C, H, W = x_nchw.shape
    O, Ig, KH, KW = w_oihw.shape
    assert O == C and C % groups == 0 and Ig == C // groups and (KH, KW) == (3, 3)
    G, Cg = groups, C // groups

    # Single boundary transpose: NCHW -> (G, N, H, W, Cg), then zero-pad spatial.
    x_g = jnp.transpose(x_nchw.reshape(N, G, Cg, H, W), (1, 0, 3, 4, 2))
    x_g = jnp.pad(x_g, ((0, 0), (0, 0), (1, 1), (1, 1), (0, 0)))

    # OIHW (C, Cg, 3, 3) -> (G, kh, kw, Cg_in, Cg_out) -> (G, 3, 3*Cg_in, Cg_out), bf16.
    w_g = jnp.transpose(w_oihw.reshape(G, Cg, Cg, KH, KW), (0, 3, 4, 2, 1))
    w_g = w_g.reshape(G, KH, KW * Cg, Cg).astype(jnp.bfloat16)

    TH = _pick_row_tile(H)           # output-row tile (divides H)
    HB = H // TH

    out_g = pl.pallas_call(
        _relu_gconv3x3_kernel,
        out_shape=jax.ShapeDtypeStruct((G, N, H, W, Cg), x_nchw.dtype),
        grid=(G, HB),
        in_specs=[
            pl.BlockSpec((1, N, H + 2, W + 2, Cg), lambda g, j: (g, 0, 0, 0, 0)),
            pl.BlockSpec((1, KH, KW * Cg, Cg), lambda g, j: (g, 0, 0, 0)),
        ],
        out_specs=pl.BlockSpec((1, N, TH, W, Cg), lambda g, j: (g, 0, j, 0, 0)),
        compiler_params=pltpu.CompilerParams(
            dimension_semantics=("parallel", "parallel")),
    )(x_g, w_g)

    # (G, N, H, W, Cg) -> NCHW with a single transpose.
    return jnp.transpose(out_g, (1, 0, 4, 2, 3)).reshape(N, C, H, W)
    # TODO(synk): for small Cg (< 128) a block-diagonal fused-groups path and a
    # W*Cg lane-flattened output store would further improve MXU/vst utilization.


if __name__ == "__main__":
    # Small shapes consistent with the module (original: (1, 1056, 28, 28), groups=4).
    N, C, H, W = 2, 32, 16, 16
    GROUPS = 4

    key = jax.random.PRNGKey(0)
    kx, kw = jax.random.split(key)
    x = jax.random.normal(kx, (N, C, H, W), jnp.float32)
    w = jax.random.normal(kw, (C, C // GROUPS, 3, 3), jnp.float32) * 0.05

    fn = jax.jit(functools.partial(relu_grouped_conv3x3, groups=GROUPS))
    out = jax.block_until_ready(fn(x, w))

    # Pure-JAX f32 reference (ReLU + grouped conv). The kernel uses bf16 MXU
    # operands with f32 accumulation, so compare with a bf16-level tolerance.
    ref = jax.lax.conv_general_dilated(
        jnp.maximum(x, 0.0), w,
        window_strides=(1, 1), padding=((1, 1), (1, 1)),
        dimension_numbers=("NCHW", "OIHW", "NCHW"),
        feature_group_count=GROUPS)
    assert out.shape == (N, C, H, W)
    assert jnp.allclose(out, ref, atol=3e-2, rtol=3e-2), float(
        jnp.max(jnp.abs(out - ref)))

    print("KERNEL_OK")
</pallas_src>

<mosaic_0001>
module attributes {stable_mosaic.version = 11 : i64} {
  func.func @_relu_gconv3x3_kernel(%arg0: i32, %arg1: i32, %arg2: memref<1x2x18x18x8xf32, #tpu.memory_space<vmem>>, %arg3: memref<1x3x24x8xbf16, #tpu.memory_space<vmem>>, %arg4: memref<1x2x8x16x8xf32, #tpu.memory_space<vmem>>) attributes {dimension_semantics = [#tpu.dimension_semantics<parallel>, #tpu.dimension_semantics<parallel>], iteration_bounds = array<i64: 4, 2>, scalar_prefetch = 0 : i64, scratch_operands = 0 : i64, tpu.core_type = #tpu.core_type<tc>, window_params = [{transform_indices = @transform_0, window_bounds = array<i64: 1, 2, 18, 18, 8>}, {transform_indices = @transform_1, window_bounds = array<i64: 1, 3, 24, 8>}, {transform_indices = @transform_2, window_bounds = array<i64: 1, 2, 8, 16, 8>}]} {
    %c8_i32 = arith.constant 8 : i32
    %0 = arith.muli %arg1, %c8_i32 : i32
    %c0 = arith.constant 0 : index
    %c0_0 = arith.constant 0 : index
    %1 = arith.index_cast %0 : i32 to index
    %c0_1 = arith.constant 0 : index
    %c0_2 = arith.constant 0 : index
    %2 = vector.load %arg2[%c0, %c0_0, %1, %c0_1, %c0_2] : memref<1x2x18x18x8xf32, #tpu.memory_space<vmem>>, vector<1x2x10x18x8xf32>
    %3 = vector.shape_cast %2 : vector<1x2x10x18x8xf32> to vector<2x10x18x8xf32>
    %cst = arith.constant 0.000000e+00 : f32
    %4 = vector.broadcast %cst : f32 to vector<2x10x18x8xf32>
    %5 = arith.maximumf %3, %4 : vector<2x10x18x8xf32>
    %6 = arith.truncf %5 : vector<2x10x18x8xf32> to vector<2x10x18x8xbf16>
    %7 = vector.extract_strided_slice %6 {offsets = [0, 0, 0, 0], sizes = [2, 10, 16, 8], strides = [1, 1, 1, 1]} : vector<2x10x18x8xbf16> to vector<2x10x16x8xbf16>
    %8 = vector.extract_strided_slice %6 {offsets = [0, 0, 1, 0], sizes = [2, 10, 16, 8], strides = [1, 1, 1, 1]} : vector<2x10x18x8xbf16> to vector<2x10x16x8xbf16>
    %9 = vector.extract_strided_slice %6 {offsets = [0, 0, 2, 0], sizes = [2, 10, 16, 8], strides = [1, 1, 1, 1]} : vector<2x10x18x8xbf16> to vector<2x10x16x8xbf16>
    %10 = tpu.concatenate %7, %8, %9 in 3 : vector<2x10x16x8xbf16>, vector<2x10x16x8xbf16>, vector<2x10x16x8xbf16> -> vector<2x10x16x24xbf16>
    %cst_3 = arith.constant 0.000000e+00 : f32
    %11 = vector.broadcast %cst_3 : f32 to vector<256x8xf32>
    %12 = vector.extract_strided_slice %10 {offsets = [0, 0, 0, 0], sizes = [2, 8, 16, 24], strides = [1, 1, 1, 1]} : vector<2x10x16x24xbf16> to vector<2x8x16x24xbf16>
    %13 = vector.shape_cast %12 : vector<2x8x16x24xbf16> to vector<256x24xbf16>
    %c0_4 = arith.constant 0 : index
    %c0_5 = arith.constant 0 : index
    %c0_6 = arith.constant 0 : index
    %c0_7 = arith.constant 0 : index
    %14 = vector.load %arg3[%c0_4, %c0_5, %c0_6, %c0_7] : memref<1x3x24x8xbf16, #tpu.memory_space<vmem>>, vector<1x1x24x8xbf16>
    %15 = vector.shape_cast %14 : vector<1x1x24x8xbf16> to vector<24x8xbf16>
    %cst_8 = arith.constant dense<0.000000e+00> : vector<256x8xf32>
    %16 = tpu.matmul %13, %15, %cst_8 {dimension_numbers = #tpu.dot_dimension_numbers<[1], [0], [0], [1], [0, 0, 1, 1], [], []>} : vector<256x24xbf16>, vector<24x8xbf16>, vector<256x8xf32> -> vector<256x8xf32>
    %17 = arith.addf %11, %16 : vector<256x8xf32>
    %18 = vector.extract_strided_slice %10 {offsets = [0, 1, 0, 0], sizes = [2, 8, 16, 24], strides = [1, 1, 1, 1]} : vector<2x10x16x24xbf16> to vector<2x8x16x24xbf16>
    %19 = vector.shape_cast %18 : vector<2x8x16x24xbf16> to vector<256x24xbf16>
    %c0_9 = arith.constant 0 : index
    %c1 = arith.constant 1 : index
    %c0_10 = arith.constant 0 : index
    %c0_11 = arith.constant 0 : index
    %20 = vector.load %arg3[%c0_9, %c1, %c0_10, %c0_11] : memref<1x3x24x8xbf16, #tpu.memory_space<vmem>>, vector<1x1x24x8xbf16>
    %21 = vector.shape_cast %20 : vector<1x1x24x8xbf16> to vector<24x8xbf16>
    %cst_12 = arith.constant dense<0.000000e+00> : vector<256x8xf32>
    %22 = tpu.matmul %19, %21, %cst_12 {dimension_numbers = #tpu.dot_dimension_numbers<[1], [0], [0], [1], [0, 0, 1, 1], [], []>} : vector<256x24xbf16>, vector<24x8xbf16>, vector<256x8xf32> -> vector<256x8xf32>
    %23 = arith.addf %17, %22 : vector<256x8xf32>
    %24 = vector.extract_strided_slice %10 {offsets = [0, 2, 0, 0], sizes = [2, 8, 16, 24], strides = [1, 1, 1, 1]} : vector<2x10x16x24xbf16> to vector<2x8x16x24xbf16>
    %25 = vector.shape_cast %24 : vector<2x8x16x24xbf16> to vector<256x24xbf16>
    %c0_13 = arith.constant 0 : index
    %c2 = arith.constant 2 : index
    %c0_14 = arith.constant 0 : index
    %c0_15 = arith.constant 0 : index
    %26 = vector.load %arg3[%c0_13, %c2, %c0_14, %c0_15] : memref<1x3x24x8xbf16, #tpu.memory_space<vmem>>, vector<1x1x24x8xbf16>
    %27 = vector.shape_cast %26 : vector<1x1x24x8xbf16> to vector<24x8xbf16>
    %cst_16 = arith.constant dense<0.000000e+00> : vector<256x8xf32>
    %28 = tpu.matmul %25, %27, %cst_16 {dimension_numbers = #tpu.dot_dimension_numbers<[1], [0], [0], [1], [0, 0, 1, 1], [], []>} : vector<256x24xbf16>, vector<24x8xbf16>, vector<256x8xf32> -> vector<256x8xf32>
    %29 = arith.addf %23, %28 : vector<256x8xf32>
    %30 = vector.shape_cast %29 : vector<256x8xf32> to vector<2x8x16x8xf32>
    %c0_17 = arith.constant 0 : index
    %c0_18 = arith.constant 0 : index
    %c0_19 = arith.constant 0 : index
    %c0_20 = arith.constant 0 : index
    %c0_21 = arith.constant 0 : index
    %31 = vector.load %arg4[%c0_17, %c0_18, %c0_19, %c0_20, %c0_21] : memref<1x2x8x16x8xf32, #tpu.memory_space<vmem>>, vector<1x2x8x16x8xf32>
    %32 = vector.shape_cast %31 : vector<1x2x8x16x8xf32> to vector<2x8x16x8xf32>
    %33 = vector.shape_cast %30 : vector<2x8x16x8xf32> to vector<1x2x8x16x8xf32>
    tpu.vector_store %arg4[%c0_17, %c0_18, %c0_19, %c0_20, %c0_21], %33 {strides = array<i32>} : memref<1x2x8x16x8xf32, #tpu.memory_space<vmem>>, vector<1x2x8x16x8xf32>,
    return
  }
  func.func @transform_0(%arg0: i32, %arg1: i32) -> (i32, i32, i32, i32, i32) {
    %c0_i32 = arith.constant 0 : i32
    %c0_i32_0 = arith.constant 0 : i32
    %c0_i32_1 = arith.constant 0 : i32
    %c0_i32_2 = arith.constant 0 : i32
    %c0_i32_3 = arith.constant 0 : i32
    return %arg0, %c0_i32, %c0_i32_0, %c0_i32_1, %c0_i32_2 : i32, i32, i32, i32, i32
  }
  func.func @transform_1(%arg0: i32, %arg1: i32) -> (i32, i32, i32, i32) {
    %c0_i32 = arith.constant 0 : i32
    %c0_i32_0 = arith.constant 0 : i32
    %c0_i32_1 = arith.constant 0 : i32
    %c0_i32_2 = arith.constant 0 : i32
    return %arg0, %c0_i32, %c0_i32_0, %c0_i32_1 : i32, i32, i32, i32
  }
  func.func @transform_2(%arg0: i32, %arg1: i32) -> (i32, i32, i32, i32, i32) {
    %c0_i32 = arith.constant 0 : i32
    %c0_i32_0 = arith.constant 0 : i32
    %c0_i32_1 = arith.constant 0 : i32
    %c0_i32_2 = arith.constant 0 : i32
    return %arg0, %c0_i32, %arg1, %c0_i32_0, %c0_i32_1 : i32, i32, i32, i32, i32
  }
}

</mosaic_0001>

<bundles_post_ra>
// kernel: relu_grouped_conv3x3.1
= control target key start
LH: loop header
LB: loop body
LE: loop exit
PB: predicated region body
PF: predicated region fallthrough
CT: control target
= control target key end

     0   :  { %s2113_s9 = smov 0   ;;  %s2115_s10 = smov 0   ;;  %s2826_s0 = inlined_call_operand.vmem [shape: f32[4,2,18,18,8], index: 0, kind: input, shape index: {}]   ;;  %s2827_s1 = inlined_call_operand.vmem [shape: bf16[4,3,24,8], index: 1, kind: input, shape index: {}]   ;;  %s2828_s2 = inlined_call_operand.vmem [shape: f32[4,2,16,16,8], index: 2, kind: output, shape index: {}]  }
   0x1   :  { %s2117_s11 = smov 0   ;;  %s2119_s12 = smov 0  }
   0x2   :  { %s2121_s13 = smov 0   ;;  %s2123_s14 = smov 0  }
   0x3   :  { %s2125_s15 = smov 0  }
   0x4 LB: > { %s21_s16 = sadd.s32 1, %s2086_s13  ;;  %s24_s17 = sadd.s32 1, %s2090_s14  ;;  %s2094_s15 = sphi %s2125_s15, %s12_s15   ;;  %s2090_s14 = sphi %s2123_s14, %s2835_s14   ;;  %s2086_s13 = sphi %s2121_s13, %s2834_s13   ;;  %s2082_s12 = sphi %s2119_s12, %s2833_s12   ;;  %s2078_s11 = sphi %s2117_s11, %s2832_s11   ;;  %s2074_s10 = sphi %s2115_s10, %s2831_s10   ;;  %s2070_s9 = sphi %s2113_s9, %s2830_s9  }
   0x5   : > { %p22_p0 = scmp.ge.s32.totalorder %s21_s16, 2  ;;  %s1726_s18 = sadd.s32 4294967295, %s2094_s15  }
   0x6   : > { %p95_p1 = scmp.ne.s32.totalorder %s2074_s10, %s2070_s9  ;;  %p96_p2 = scmp.eq.s32.totalorder %s1726_s18, 7 }
   0x7   : > { %s2837_s16 = smov (%p22_p0, %s21_s16), 0  ;;  %s2839_s17 = smov (!%p22_p0, %s24_s17), %s2090_s14 }
   0x8   : > { %s81_s19 = ssub.s32 %s2086_s13, %s2837_s16  ;;  %p26_p3 = scmp.ge.s32.totalorder %s2839_s17, 4 }
   0x9   : > { %p1730_p4 = scmp.ge.s32.totalorder %s2094_s15, 1  ;;  %p2159_p5 = por %p96_p2, %p95_p1 }
   0xa   : > { %p136_p6 = scmp.lt.s32.totalorder %s2094_s15, 9  ;;  %s2841_s17 = smov (%p26_p3, %s2839_s17), 0 }
   0xb   : > { %s80_s21 = ssub.s32 %s2090_s14, %s2841_s17  ;;  %s85_s23 = sadd.s32 1, %s2074_s10 }
   0xc   : > { %p137_p7 = pnand %p1730_p4, %p136_p6  ;;  %s82_s22 = sor.u32 %s81_s19, %s80_s21 }
   0xd   : > { %p83_p8 = scmp.eq.s32.totalorder %s82_s22, 0  ;;  %p162_p9 = scmp.lt.s32.totalorder (!%p137_p7), %s2082_s12, 3 }
   0xe   : > { %140 = sbr.rel (%p137_p7) target bundleno = 487 (0x1e7), region = 28  ;;  %s2096_s4 = smov (!%p137_p7), 16  }
   0xf   : > { %s2170_s24 = scalar_select %p83_p8, %s2074_s10, %s85_s23  }
  0x10   : > { %s1735_s26 = smul.u32 (!%p137_p7), 192, %s2078_s11  ;;  %s2097_s6 = smov (!%p137_p7), 8  }
  0x11   : > { %s159_s19 = sand.u32 (!%p137_p7), 1, %s2070_s9  }
  0x12   : > { %s1731_s21 = sshll.u32 (!%p137_p7), %s159_s19, 8 }
  0x13   : > { %s2174_s25 = scalar_select %p162_p9, %s2082_s12, 3  ;;  %vm658_vm0 = vcmask 1046528   ;;  %vm337_vm1 = vsmask.f32 7424  ;;  %vm890_vm2 = vcmask 1043456   ;;  %vm759_vm3 = vcmask 64512  }
  0x14   : > { %vm800_vm4 = vcmask 130048   ;;  %vm857_vm5 = vcmask 195584   ;;  %s2646_s22 = scalar_lea.vmem [#allocation2], %s1731_s21  ;;  %s1803_s9 = sshll.u32 (%p2159_p5), %s2078_s11, 4 }
  0x15   : > { %s1974_s27 = smul.u32 864, %s2174_s25  ;;  %s1799_s23 = sshll.u32 (%p2159_p5), %s2082_s12, 6 }
  0x16   : > { %s1975_s5 = smul.u32 36, %s2174_s25  ;;  %s1487_s20 = sadd.s32 (%p2159_p5), %s1803_s9, %s1799_s23 }
  0x17   : > { %s166_s30 = scalar_lea.vmem %s2826_s0, %s1974_s27  ;;  %s1800_s25 = sshll.u32 (%p2159_p5), %s1487_s20, 3 }
  0x18   : > { %s2181_s3 = scalar_lea.vmem %s166_s30, %s1735_s26  ;;  %s2257_s18 = scalar_lea.vmem %s2827_s1, %s1975_s5 }
  0x19   : > { %v213_v0 = vld [vmem:[%s2181_s3 + $0x1e0] sm:$0xff]  ;;  %v214_v1 = vld [vmem:[%s2181_s3 + $0x1e8] sm:$0xff]  ;;  %v215_v2 = vld [vmem:[%s2181_s3 + $0x1f0] sm:$0x3]  ;;  %s2748_s28 = scalar_lea.vmem (%p2159_p5), %s2828_s2, %s1800_s25 }
  0x1a   : > { %v273_v3 = vmax.f32 %v213_v0, 0.0  ;;  %v274_v4 = vmax.f32 %v214_v1, 0.0  ;;  %v275_v5 = vmax.f32 %v215_v2, 0.0  ;;  %v210_v6 = vld [vmem:[%s2181_s3 + $0x1c8] sm:$0xff]  ;;  %v211_v7 = vld [vmem:[%s2181_s3 + $0x1d0] sm:$0xff]  ;;  %v184_v12 = vld [vmem:[%s2181_s3 + $0x38] sm:$0xff] }
  0x1b   : > { %v183_v8 = vld [vmem:[%s2181_s3 + $0x30] sm:$0xff]  ;;  %v212_v9 = vld [vmem:[%s2181_s3 + $0x1d8] sm:$0x3]  ;;  %v270_v10 = vmax.f32 %v210_v6, 0.0  ;;  %v271_v11 = vmax.f32 %v211_v7, 0.0  ;;  %v244_v18 = vmax.f32 %v184_v12, 0.0 }
  0x1c   : > { %v243_v13 = vmax.f32 %v183_v8, 0.0  ;;  %v2191_v14 = vpack.c.bf16 %v274_v4, %v273_v3  ;;  %v2193_v15 = vpack.c.bf16 %v275_v5, %v275_v5  ;;  %v272_v16 = vmax.f32 %v212_v9, 0.0  ;;  %v185_v17 = vld [vmem:[%s2181_s3 + $0x40] sm:$0x3]  ;;  %v180_v19 = vld [vmem:[%s2181_s3 + $0x18] sm:$0xff]  ;;  %v219_v1 = vld [vmem:[%s2181_s3 + $0x210] sm:$0xff] }
  0x1d   : > { %v181_v20 = vld [vmem:[%s2181_s3 + $0x20] sm:$0xff]  ;;  %v2198_v21 = vpack.c.bf16 %v271_v11, %v270_v10  ;;  %v245_v22 = vmax.f32 %v185_v17, 0.0  ;;  %v182_v23 = vld [vmem:[%s2181_s3 + $0x28] sm:$0x3]  ;;  %v240_v24 = vmax.f32 %v180_v19, 0.0  ;;  %v216_v26 = vld [vmem:[%s2181_s3 + $0x1f8] sm:$0xff] }
  0x1e   : > { %v241_v25 = vmax.f32 %v181_v20, 0.0  ;;  %v695_v27 = vrot.slane %v2191_v14, 1  ;;  %v696_v28 = vrot.slane %v2193_v15, 1  ;;  %v320_v29 = vpack.c.bf16 %v272_v16, %v272_v16  ;;  %v217_v31 = vld [vmem:[%s2181_s3 + $0x200] sm:$0xff]  ;;  %v218_v36 = vld [vmem:[%s2181_s3 + $0x208] sm:$0x3] }
  0x1f   : > { %v2204_v30 = vpack.c.bf16 %v244_v18, %v243_v13  ;;  %v692_v32 = vrot.slane %v2198_v21, 1  ;;  %v302_v33 = vpack.c.bf16 %v245_v22, %v245_v22  ;;  %v242_v34 = vmax.f32 %v182_v23, 0.0  ;;  %v220_v2 = vld [vmem:[%s2181_s3 + $0x218] sm:$0xff]  ;;  %v221_v7 = vld [vmem:[%s2181_s3 + $0x220] sm:$0x3]  ;;  %v186_v23 = vld [vmem:[%s2181_s3 + $0x48] sm:$0xff] }
  0x20   : > { %v2208_v35 = vpack.c.bf16 %v241_v25, %v240_v24  ;;  %v697_v37 = vsel %vm658_vm0, %v695_v27, %v696_v28  ;;  %v693_v38 = vrot.slane %v320_v29, 1  ;;  %v276_v40 = vmax.f32 %v216_v26, 0.0  ;;  %v187_v24 = vld [vmem:[%s2181_s3 + $0x50] sm:$0xff] }
  0x21   : > { %v665_v39 = vrot.slane %v2204_v30, 1  ;;  %743 = vrot.lane.b32.xlu0 %v697_v37, %s2096_s4  ;;  %v666_v41 = vrot.slane %v302_v33, 1  ;;  %v300_v42 = vpack.c.bf16 %v242_v34, %v242_v34  ;;  %v277_v44 = vmax.f32 %v217_v31, 0.0 }
  0x22   : > { %v662_v43 = vrot.slane %v2208_v35, 1  ;;  %v694_v45 = vsel %vm658_vm0, %v692_v32, %v693_v38  ;;  %v278_v46 = vmax.f32 %v218_v36, 0.0  ;;  %v351_v47 = vshrl.u32 %v2208_v35, 16 }
  0x23   : > { %v353_v48 = vshll.u32 %v2208_v35, 16  ;;  %741 = vrot.lane.b32.xlu1 %v694_v45, %s2096_s4  ;;  %v667_v49 = vsel %vm658_vm0, %v665_v39, %v666_v41  ;;  %v663_v50 = vrot.slane %v300_v42, 1  ;;  %v2220_v51 = vpack.c.bf16 %v277_v44, %v276_v40 }
  0x24   : > { %v358_v52 = vshll.u32 %v300_v42, 16  ;;  %v324_v53 = vpack.c.bf16 %v278_v46, %v278_v46  ;;  %v471_v55 = vshrl.u32 %v2198_v21, 16  ;;  %v473_v56 = vshll.u32 %v2198_v21, 16 }
  0x25   : > { %v355_v54 = vrot.slane %v353_v48, 1  ;;  %v664_v57 = vsel %vm658_vm0, %v662_v43, %v663_v50  ;;  %v698_v58 = vrot.slane %v2220_v51, 1  ;;  %v478_v60 = vshll.u32 %v320_v29, 16  ;;  %v190_v48 = vld [vmem:[%s2181_s3 + $0x68] sm:$0xff] }
  0x26   : > { %v360_v59 = vrot.slane %v358_v52, 1  ;;  %721 = vrot.lane.b32.xlu0 %v664_v57, %s2096_s4  ;;  %v699_v61 = vrot.slane %v324_v53, 1  ;;  %v475_v63 = vrot.slane %v473_v56, 1  ;;  %v363_v0 = vshrl.u32 %v2204_v30, 16 }
  0x27   : > { %v356_v62 = vor.u32 %v355_v54, %v351_v47  ;;  %723 = vrot.lane.b32.xlu1 %v667_v49, %s2096_s4  ;;  %v480_v3 = vrot.slane %v478_v60, 1  ;;  %v365_v4 = vshll.u32 %v2204_v30, 16  ;;  %v370_v5 = vshll.u32 %v302_v33, 16  ;;  %v188_v33 = vld [vmem:[%s2181_s3 + $0x58] sm:$0x3]  ;;  %v189_v47 = vld [vmem:[%s2181_s3 + $0x60] sm:$0xff] }
  0x28   : > { %v483_v6 = vshrl.u32 %v2191_v14, 16  ;;  %v700_v8 = vsel %vm658_vm0, %v698_v58, %v699_v61  ;;  %v476_v10 = vor.u32 %v475_v63, %v471_v55  ;;  %v485_v11 = vshll.u32 %v2191_v14, 16  ;;  %v222_v49 = vld [vmem:[%s2181_s3 + $0x228] sm:$0xff]  ;;  %v191_v55 = vld [vmem:[%s2181_s3 + $0x70] sm:$0x3] }
  0x29   : > { %v361_v9 = vsel %vm337_vm1, %v356_v62, %v360_v59  ;;  %v367_v12 = vrot.slane %v365_v4, 1  ;;  %v372_v13 = vrot.slane %v370_v5, 1  ;;  %v490_v16 = vshll.u32 %v2193_v15, 16  ;;  %v2270_v59 = vld [vmem:[%s2257_s18 + $0x14] ss:$0 sps:$4 sm:$0xff]  }
  0x2a   : > { %v279_v17 = vmax.f32 %v219_v1, 0.0  ;;  %745 = vrot.lane.b32.xlu0 %v700_v8, %s2096_s4  ;;  %v481_v18 = vsel %vm337_vm1, %v476_v10, %v480_v3  ;;  %v487_v19 = vrot.slane %v485_v11, 1  ;;  %v280_v20 = vmax.f32 %v220_v2, 0.0  ;;  %v224_v1 = vld [vmem:[%s2181_s3 + $0x238] sm:$0x3]  ;;  %1970 = vmatprep.subr.msk.bf16.mxu0 %vm890_vm2, %v2270_v59 }
  0x2b   : > { %v281_v22 = vmax.f32 %v221_v7, 0.0  ;;  %580 = vrot.lane.b32.xlu1 %v361_v9, %s2097_s6  ;;  %v368_v25 = vor.u32 %v367_v12, %v363_v0  ;;  %v492_v26 = vrot.slane %v490_v16, 1  ;;  %v495_v27 = vshrl.u32 %v2220_v51, 16  ;;  %v223_v0 = vld [vmem:[%s2181_s3 + $0x230] sm:$0xff]  ;;  %v226_v7 = vld [vmem:[%s2181_s3 + $0x248] sm:$0xff]  ;;  %1971 = vmatprep.subr.msk.bf16.mxu1 %vm890_vm2, %v2270_v59 }
  0x2c   : > { %v497_v15 = vshll.u32 %v2220_v51, 16  ;;  %v488_v28 = vor.u32 %v487_v19, %v483_v6  ;;  %v2246_v29 = vpack.c.bf16 %v280_v20, %v279_v17  ;;  %v502_v32 = vshll.u32 %v324_v53, 16  ;;  %v225_v6 = vld [vmem:[%s2181_s3 + $0x240] sm:$0xff]  ;;  %v227_v12 = vld [vmem:[%s2181_s3 + $0x250] sm:$0x3] }
  0x2d   : > { %v326_v31 = vpack.c.bf16 %v281_v22, %v281_v22  ;;  %v373_v34 = vsel %vm337_vm1, %v368_v25, %v372_v13  ;;  %v246_v37 = vmax.f32 %v186_v23, 0.0  ;;  %v247_v38 = vmax.f32 %v187_v24, 0.0 }
  0x2e   : > { %v499_v36 = vrot.slane %v497_v15, 1  ;;  %600 = vrot.lane.b32.xlu0 %v481_v18, %s2097_s6  ;;  %v493_v39 = vsel %vm337_vm1, %v488_v28, %v492_v26  ;;  %v507_v40 = vshrl.u32 %v2246_v29, 16  ;;  %v509_v41 = vshll.u32 %v2246_v29, 16 }
  0x2f   : > { %v514_v42 = vshll.u32 %v326_v31, 16  ;;  %582 = vrot.lane.b32.xlu1 %v373_v34, %s2097_s6  ;;  %v504_v44 = vrot.slane %v502_v32, 1  ;;  %v248_v45 = vmax.f32 %v188_v33, 0.0  ;;  %v2260_v46 = vpack.c.bf16 %v247_v38, %v246_v37 }
  0x30   : > { %v500_v43 = vor.u32 %v499_v36, %v495_v27  ;;  %v511_v50 = vrot.slane %v509_v41, 1  ;;  %v701_v53 = vrot.slane %v2246_v29, 1  ;;  %v702_v54 = vrot.slane %v326_v31, 1 }
  0x31   : > { %v516_v52 = vrot.slane %v514_v42, 1  ;;  %v304_v56 = vpack.c.bf16 %v248_v45, %v248_v45  ;;  %v375_v57 = vshrl.u32 %v2260_v46, 16  ;;  %v377_v58 = vshll.u32 %v2260_v46, 16  ;;  %v192_v42 = vld [vmem:[%s2181_s3 + $0x78] sm:$0xff] }
  0x32   : > { %602 = vrot.lane.b32.xlu0 %v493_v39, %s2097_s6  ;;  %v512_v60 = vor.u32 %v511_v50, %v507_v40  ;;  %v505_v61 = vsel %vm337_vm1, %v500_v43, %v504_v44  ;;  %v249_v62 = vmax.f32 %v189_v47, 0.0  ;;  %v250_v63 = vmax.f32 %v190_v48, 0.0  ;;  %v193_v48 = vld [vmem:[%s2181_s3 + $0x80] sm:$0xff] }
  0x33   : > { %v379_v2 = vrot.slane %v377_v58, 1  ;;  %v382_v3 = vshll.u32 %v304_v56, 16  ;;  %v251_v4 = vmax.f32 %v191_v55, 0.0  ;;  %v668_v5 = vrot.slane %v2260_v46, 1  ;;  %v195_v55 = vld [vmem:[%s2181_s3 + $0x90] sm:$0xff] }
  0x34   : > { %v517_v8 = vsel %vm337_vm1, %v512_v60, %v516_v52  ;;  %v2284_v9 = vpack.c.bf16 %v250_v63, %v249_v62  ;;  %v669_v10 = vrot.slane %v304_v56, 1  ;;  %v282_v11 = vmax.f32 %v222_v49, 0.0  ;;  %v194_v49 = vld [vmem:[%s2181_s3 + $0x88] sm:$0x3] }
  0x35   : > { %606 = vrot.lane.b32.xlu1 %v517_v8, %s2097_s6  ;;  %v380_v13 = vor.u32 %v379_v2, %v375_v57  ;;  %v384_v16 = vrot.slane %v382_v3, 1  ;;  %v306_v17 = vpack.c.bf16 %v251_v4, %v251_v4  ;;  %v283_v18 = vmax.f32 %v223_v0, 0.0  ;;  %v197_v2 = vld [vmem:[%s2181_s3 + $0xa0] sm:$0x3]  ;;  %v228_v3 = vld [vmem:[%s2181_s3 + $0x258] sm:$0xff] }
  0x36   : > { %604 = vrot.lane.b32.xlu0 %v505_v61, %s2097_s6  ;;  %v703_v19 = vsel %vm658_vm0, %v701_v53, %v702_v54  ;;  %v387_v20 = vshrl.u32 %v2284_v9, 16  ;;  %v389_v22 = vshll.u32 %v2284_v9, 16  ;;  %v671_v23 = vrot.slane %v2284_v9, 1  ;;  %v196_v61 = vld [vmem:[%s2181_s3 + $0x98] sm:$0xff] }
  0x37   : > { %v385_v24 = vsel %vm337_vm1, %v380_v13, %v384_v16  ;;  %v394_v25 = vshll.u32 %v306_v17, 16  ;;  %v672_v26 = vrot.slane %v306_v17, 1  ;;  %v284_v27 = vmax.f32 %v224_v1, 0.0 }
  0x38   : > { %v391_v15 = vrot.slane %v389_v22, 1  ;;  %v2294_v28 = vpack.c.bf16 %v283_v18, %v282_v11  ;;  %v285_v31 = vmax.f32 %v225_v6, 0.0  ;;  %v286_v32 = vmax.f32 %v226_v7, 0.0  ;;  %v229_v18 = vld [vmem:[%s2181_s3 + $0x260] sm:$0xff] }
  0x39   : > { %584 = vrot.lane.b32.xlu1 %v385_v24, %s2097_s6  ;;  %v396_v33 = vrot.slane %v394_v25, 1  ;;  %v670_v34 = vsel %vm658_vm0, %v668_v5, %v669_v10  ;;  %v328_v36 = vpack.c.bf16 %v284_v27, %v284_v27  ;;  %v287_v37 = vmax.f32 %v227_v12, 0.0 }
  0x3a   : > { %747 = vrot.lane.b32.xlu0 %v703_v19, %s2096_s4  ;;  %v392_v38 = vor.u32 %v391_v15, %v387_v20  ;;  %v519_v39 = vshrl.u32 %v2294_v28, 16  ;;  %v521_v40 = vshll.u32 %v2294_v28, 16  ;;  %v2301_v41 = vpack.c.bf16 %v286_v32, %v285_v31  ;;  %v230_v19 = vld [vmem:[%s2181_s3 + $0x268] sm:$0x3] }
  0x3b   : > { %v673_v43 = vsel %vm658_vm0, %v671_v23, %v672_v26  ;;  %v526_v44 = vshll.u32 %v328_v36, 16  ;;  %v330_v45 = vpack.c.bf16 %v287_v37, %v287_v37  ;;  %v704_v47 = vrot.slane %v2294_v28, 1  ;;  %v231_v37 = vld [vmem:[%s2181_s3 + $0x270] sm:$0xff] }
  0x3c   : > { %v397_v50 = vsel %vm337_vm1, %v392_v38, %v396_v33  ;;  %v523_v52 = vrot.slane %v521_v40, 1  ;;  %v531_v53 = vshrl.u32 %v2301_v41, 16  ;;  %v533_v54 = vshll.u32 %v2301_v41, 16 }
  0x3d   : > { %586 = vrot.lane.b32.xlu1 %v397_v50, %s2097_s6  ;;  %v528_v56 = vrot.slane %v526_v44, 1  ;;  %v538_v57 = vshll.u32 %v330_v45, 16  ;;  %v705_v58 = vrot.slane %v328_v36, 1  ;;  %v252_v60 = vmax.f32 %v192_v42, 0.0 }
  0x3e   : > { %725 = vrot.lane.b32.xlu0 %v670_v34, %s2096_s4  ;;  %v524_v62 = vor.u32 %v523_v52, %v519_v39  ;;  %v535_v63 = vrot.slane %v533_v54, 1  ;;  %v253_v0 = vmax.f32 %v193_v48, 0.0  ;;  %v254_v1 = vmax.f32 %v194_v49, 0.0  ;;  %v232_v48 = vld [vmem:[%s2181_s3 + $0x278] sm:$0xff]  ;;  %v233_v49 = vld [vmem:[%s2181_s3 + $0x280] sm:$0x3] }
  0x3f   : > { %v540_v4 = vrot.slane %v538_v57, 1  ;;  %v707_v5 = vrot.slane %v2301_v41, 1  ;;  %v708_v6 = vrot.slane %v330_v45, 1  ;;  %v255_v7 = vmax.f32 %v195_v55, 0.0  ;;  %v198_v55 = vld [vmem:[%s2181_s3 + $0xa8] sm:$0xff] }
  0x40   : > { %v529_v8 = vsel %vm337_vm1, %v524_v62, %v528_v56  ;;  %v536_v10 = vor.u32 %v535_v63, %v531_v53  ;;  %v2319_v11 = vpack.c.bf16 %v253_v0, %v252_v60  ;;  %v308_v12 = vpack.c.bf16 %v254_v1, %v254_v1  ;;  %v199_v0 = vld [vmem:[%s2181_s3 + $0xb0] sm:$0xff]  ;;  %v200_v1 = vld [vmem:[%s2181_s3 + $0xb8] sm:$0x3] }
  0x41   : > { %727 = vrot.lane.b32.xlu1 %v673_v43, %s2096_s4  ;;  %v706_v13 = vsel %vm658_vm0, %v704_v47, %v705_v58  ;;  %v256_v16 = vmax.f32 %v196_v61, 0.0  ;;  %v257_v17 = vmax.f32 %v197_v2, 0.0  ;;  %v288_v20 = vmax.f32 %v228_v3, 0.0 }
  0x42   : > { %608 = vrot.lane.b32.xlu0 %v529_v8, %s2097_s6  ;;  %v541_v22 = vsel %vm337_vm1, %v536_v10, %v540_v4  ;;  %v399_v23 = vshrl.u32 %v2319_v11, 16  ;;  %v401_v24 = vshll.u32 %v2319_v11, 16  ;;  %v406_v25 = vshll.u32 %v308_v12, 16 }
  0x43   : > { %v709_v26 = vsel %vm658_vm0, %v707_v5, %v708_v6  ;;  %v2330_v27 = vpack.c.bf16 %v256_v16, %v255_v7  ;;  %v310_v15 = vpack.c.bf16 %v257_v17, %v257_v17  ;;  %v674_v31 = vrot.slane %v2319_v11, 1 }
  0x44   : > { %v403_v32 = vrot.slane %v401_v24, 1  ;;  %v408_v33 = vrot.slane %v406_v25, 1  ;;  %v289_v34 = vmax.f32 %v229_v18, 0.0  ;;  %v290_v36 = vmax.f32 %v230_v19, 0.0  ;;  %v201_v18 = vld [vmem:[%s2181_s3 + $0xc0] sm:$0xff]  ;;  %v202_v19 = vld [vmem:[%s2181_s3 + $0xc8] sm:$0xff] }
  0x45   : > { %610 = vrot.lane.b32.xlu1 %v541_v22, %s2097_s6  ;;  %v411_v38 = vshrl.u32 %v2330_v27, 16  ;;  %v413_v39 = vshll.u32 %v2330_v27, 16  ;;  %v418_v40 = vshll.u32 %v310_v15, 16  ;;  %v675_v42 = vrot.slane %v308_v12, 1 }
  0x46   : > { %749 = vrot.lane.b32.xlu0 %v706_v13, %s2096_s4  ;;  %v404_v43 = vor.u32 %v403_v32, %v399_v23  ;;  %v677_v44 = vrot.slane %v2330_v27, 1  ;;  %v678_v45 = vrot.slane %v310_v15, 1  ;;  %v2339_v47 = vpack.c.bf16 %v289_v34, %v288_v20  ;;  %v203_v32 = vld [vmem:[%s2181_s3 + $0xd0] sm:$0x3] }
  0x47   : > { %v415_v50 = vrot.slane %v413_v39, 1  ;;  %v420_v52 = vrot.slane %v418_v40, 1  ;;  %v332_v53 = vpack.c.bf16 %v290_v36, %v290_v36  ;;  %v291_v54 = vmax.f32 %v231_v37, 0.0 }
  0x48   : > { %v409_v56 = vsel %vm337_vm1, %v404_v43, %v408_v33  ;;  %v543_v57 = vshrl.u32 %v2339_v47, 16  ;;  %v545_v58 = vshll.u32 %v2339_v47, 16  ;;  %v292_v62 = vmax.f32 %v232_v48, 0.0 }
  0x49   : > { %588 = vrot.lane.b32.xlu1 %v409_v56, %s2097_s6  ;;  %v416_v60 = vor.u32 %v415_v50, %v411_v38  ;;  %v550_v61 = vshll.u32 %v332_v53, 16  ;;  %v293_v63 = vmax.f32 %v233_v49, 0.0  ;;  %v676_v2 = vsel %vm658_vm0, %v674_v31, %v675_v42  ;;  %v177_v38 = vld [vmem:[%s2181_s3] sm:$0xff]  ;;  %v178_v49 = vld [vmem:[%s2181_s3 + $0x8] sm:$0xff] }
  0x4a   : > { %751 = vrot.lane.b32.xlu0 %v709_v26, %s2096_s4  ;;  %v679_v3 = vsel %vm658_vm0, %v677_v44, %v678_v45  ;;  %v547_v4 = vrot.slane %v545_v58, 1  ;;  %v258_v5 = vmax.f32 %v198_v55, 0.0  ;;  %v2354_v8 = vpack.c.bf16 %v292_v62, %v291_v54  ;;  %v179_v54 = vld [vmem:[%s2181_s3 + $0x10] sm:$0x3]  ;;  %v205_v62 = vld [vmem:[%s2181_s3 + $0xe0] sm:$0xff] }
  0x4b   : > { %v421_v6 = vsel %vm337_vm1, %v416_v60, %v420_v52  ;;  %v552_v7 = vrot.slane %v550_v61, 1  ;;  %v334_v10 = vpack.c.bf16 %v293_v63, %v293_v63  ;;  %v710_v13 = vrot.slane %v2339_v47, 1  ;;  %v204_v61 = vld [vmem:[%s2181_s3 + $0xd8] sm:$0xff] }
  0x4c   : > { %v548_v12 = vor.u32 %v547_v4, %v543_v57  ;;  %v259_v16 = vmax.f32 %v199_v0, 0.0  ;;  %v260_v17 = vmax.f32 %v200_v1, 0.0  ;;  %v555_v20 = vshrl.u32 %v2354_v8, 16 }
  0x4d   : > { %590 = vrot.lane.b32.xlu1 %v421_v6, %s2097_s6  ;;  %v557_v22 = vshll.u32 %v2354_v8, 16  ;;  %v562_v23 = vshll.u32 %v334_v10, 16  ;;  %v711_v24 = vrot.slane %v332_v53, 1  ;;  %v713_v31 = vrot.slane %v2354_v8, 1  ;;  %v206_v6 = vld [vmem:[%s2181_s3 + $0xe8] sm:$0x3] }
  0x4e   : > { %729 = vrot.lane.b32.xlu0 %v676_v2, %s2096_s4  ;;  %v553_v25 = vsel %vm337_vm1, %v548_v12, %v552_v7  ;;  %v2364_v26 = vpack.c.bf16 %v259_v16, %v258_v5  ;;  %v2366_v15 = vpack.c.bf16 %v260_v17, %v260_v17  ;;  %v261_v36 = vmax.f32 %v201_v18, 0.0 }
  0x4f   : > { %v559_v33 = vrot.slane %v557_v22, 1  ;;  %v564_v34 = vrot.slane %v562_v23, 1  ;;  %v262_v37 = vmax.f32 %v202_v19, 0.0  ;;  %v714_v43 = vrot.slane %v334_v10, 1  ;;  %v208_v22 = vld [vmem:[%s2181_s3 + $0x1b8] sm:$0xff] }
  0x50   : > { %v423_v39 = vshrl.u32 %v2364_v26, 16  ;;  %v425_v40 = vshll.u32 %v2364_v26, 16  ;;  %v430_v42 = vshll.u32 %v2366_v15, 16  ;;  %v263_v45 = vmax.f32 %v203_v32, 0.0 }
  0x51   : > { %731 = vrot.lane.b32.xlu1 %v679_v3, %s2096_s4  ;;  %v560_v44 = vor.u32 %v559_v33, %v555_v20  ;;  %v2375_v48 = vpack.c.bf16 %v262_v37, %v261_v36  ;;  %v712_v50 = vsel %vm658_vm0, %v710_v13, %v711_v24  ;;  %v237_v55 = vmax.f32 %v177_v38, 0.0  ;;  %v207_v20 = vld [vmem:[%s2181_s3 + $0x1b0] sm:$0xff]  ;;  %v209_v38 = vld [vmem:[%s2181_s3 + $0x1c0] sm:$0x3] }
  0x52   : > { %612 = vrot.lane.b32.xlu0 %v553_v25, %s2097_s6  ;;  %v427_v52 = vrot.slane %v425_v40, 1  ;;  %v432_v53 = vrot.slane %v430_v42, 1  ;;  %v314_v57 = vpack.c.bf16 %v263_v45, %v263_v45  ;;  %v715_v0 = vsel %vm658_vm0, %v713_v31, %v714_v43 }
  0x53   : > { %v565_v56 = vsel %vm337_vm1, %v560_v44, %v564_v34  ;;  %v435_v58 = vshrl.u32 %v2375_v48, 16  ;;  %v437_v60 = vshll.u32 %v2375_v48, 16  ;;  %v238_v1 = vmax.f32 %v178_v49, 0.0  ;;  %v2035_v49 = vld [vmem:[%s2257_s18 + $0xc] sm:$0xff]  }
  0x54   : > { %v428_v63 = vor.u32 %v427_v52, %v423_v39  ;;  %v442_v3 = vshll.u32 %v314_v57, 16  ;;  %v680_v4 = vrot.slane %v2364_v26, 1  ;;  %v239_v5 = vmax.f32 %v179_v54, 0.0 }
  0x55   : > { %614 = vrot.lane.b32.xlu1 %v565_v56, %s2097_s6  ;;  %v439_v2 = vrot.slane %v437_v60, 1  ;;  %v2392_v10 = vpack.c.bf16 %v238_v1, %v237_v55  ;;  %v264_v12 = vmax.f32 %v204_v61, 0.0  ;;  %v265_v13 = vmax.f32 %v205_v62, 0.0  ;;  %v234_v55 = vld [vmem:[%s2181_s3 + $0x288] sm:$0xff]  ;;  %v235_v61 = vld [vmem:[%s2181_s3 + $0x290] sm:$0xff] }
  0x56   : > { %753 = vrot.lane.b32.xlu0 %v712_v50, %s2096_s4  ;;  %v433_v7 = vsel %vm337_vm1, %v428_v63, %v432_v53  ;;  %v444_v17 = vrot.slane %v442_v3, 1  ;;  %v681_v18 = vrot.slane %v2366_v15, 1  ;;  %v298_v19 = vpack.c.bf16 %v239_v5, %v239_v5  ;;  %v236_v62 = vld [vmem:[%s2181_s3 + $0x298] sm:$0x3] }
  0x57   : > { %v440_v16 = vor.u32 %v439_v2, %v435_v58  ;;  %v683_v23 = vrot.slane %v2375_v48, 1  ;;  %v339_v24 = vshrl.u32 %v2392_v10, 16  ;;  %v341_v25 = vshll.u32 %v2392_v10, 16 }
  0x58   : > { %v266_v31 = vmax.f32 %v206_v6, 0.0  ;;  %v684_v33 = vrot.slane %v314_v57, 1  ;;  %v346_v34 = vshll.u32 %v298_v19, 16  ;;  %v2402_v36 = vpack.c.bf16 %v265_v13, %v264_v12  ;;  %v2036_v6 = vld [vmem:[%s2257_s18 + $0x8] ss:$0 sps:$4 sm:$0xff]  }
  0x59   : > { %592 = vrot.lane.b32.xlu1 %v433_v7, %s2097_s6  ;;  %v445_v32 = vsel %vm337_vm1, %v440_v16, %v444_v17  ;;  %v343_v15 = vrot.slane %v341_v25, 1  ;;  %v267_v39 = vmax.f32 %v207_v20, 0.0  ;;  %v268_v40 = vmax.f32 %v208_v22, 0.0 }
  0x5a   : > { %755 = vrot.lane.b32.xlu0 %v715_v0, %s2096_s4  ;;  %v2405_v37 = vpack.c.bf16 %v266_v31, %v266_v31  ;;  %v682_v42 = vsel %vm658_vm0, %v680_v4, %v681_v18  ;;  %v348_v43 = vrot.slane %v346_v34, 1  ;;  %v447_v44 = vshrl.u32 %v2402_v36, 16 }
  0x5b   : > { %v449_v45 = vshll.u32 %v2402_v36, 16  ;;  %v344_v50 = vor.u32 %v343_v15, %v339_v24  ;;  %v659_v52 = vrot.slane %v2392_v10, 1  ;;  %v660_v53 = vrot.slane %v298_v19, 1 }
  0x5c   : > { %v454_v54 = vshll.u32 %v2405_v37, 16  ;;  %v269_v57 = vmax.f32 %v209_v38, 0.0  ;;  %v2416_v58 = vpack.c.bf16 %v268_v40, %v267_v39  ;;  %v892_v60 = vsel %vm890_vm2, %v2270_v59, 0  ;;  %v2037_v59 = vld [vmem:[%s2257_s18 + $0x20] ss:$0 sps:$4 sm:$0xff]  }
  0x5d   : > { %594 = vrot.lane.b32.xlu1 %v445_v32, %s2097_s6  ;;  %v451_v56 = vrot.slane %v449_v45, 1  ;;  %v685_v63 = vsel %vm658_vm0, %v683_v23, %v684_v33  ;;  %v349_v0 = vsel %vm337_vm1, %v344_v50, %v348_v43  ;;  %1859 = vmatpush3.bf16.msra.mxu0 %v892_v60  ;;  %v294_v7 = vmax.f32 %v234_v55, 0.0 }
  0x5e   : > { %733 = vrot.lane.b32.xlu0 %v682_v42, %s2096_s4  ;;  %v456_v1 = vrot.slane %v454_v54, 1  ;;  %v318_v3 = vpack.c.bf16 %v269_v57, %v269_v57  ;;  %v459_v4 = vshrl.u32 %v2416_v58, 16  ;;  %v461_v5 = vshll.u32 %v2416_v58, 16  ;;  %1860 = vmatprep.subr.bf16.mxu0 %v2035_v49 }
  0x5f   : > { %v452_v2 = vor.u32 %v451_v56, %v447_v44  ;;  %1968 = vmatpush3.bf16.msra.mxu1 %v892_v60  ;;  %v295_v12 = vmax.f32 %v235_v61, 0.0  ;;  %v296_v13 = vmax.f32 %v236_v62, 0.0  ;;  %v661_v16 = vsel %vm658_vm0, %v659_v52, %v660_v53 }
  0x60   : > { %1967 = vmatprep.subr.bf16.mxu1 %v2035_v49  ;;  %v463_v17 = vrot.slane %v461_v5, 1  ;;  %v466_v18 = vshll.u32 %v318_v3, 16  ;;  %v686_v19 = vrot.slane %v2402_v36, 1  ;;  %v687_v20 = vrot.slane %v2405_v37, 1 }
  0x61   : > { %735 = vrot.lane.b32.xlu1 %v685_v63, %s2096_s4  ;;  %v2434_v22 = vpack.c.bf16 %v295_v12, %v294_v7  ;;  %v336_v23 = vpack.c.bf16 %v296_v13, %v296_v13  ;;  %1861 = vmatpush3.bf16.msra.mxu0 %v2035_v49  ;;  %v457_v24 = vsel %vm337_vm1, %v452_v2, %v456_v1  ;;  %v1069_v32 = vsel %vm890_vm2, %v2036_v6, 0  ;;  %v2038_v7 = vld [vmem:[%s2257_s18] sm:$0xff]  }
  0x62   : > { %578 = vrot.lane.b32.xlu0 %v349_v0, %s2097_s6  ;;  %v464_v25 = vor.u32 %v463_v17, %v459_v4  ;;  %v468_v31 = vrot.slane %v466_v18, 1  ;;  %1973 = vmatprep.subr.msk.bf16.mxu0 %vm890_vm2, %v2037_v59  ;;  %v1250_v37 = vsel %vm890_vm2, %v2037_v59, 0  ;;  %v688_v38 = vsel %vm658_vm0, %v686_v19, %v687_v20 }
  0x63   : > { %1969 = vmatpush3.bf16.msra.mxu1 %v2035_v49  ;;  %v567_v33 = vshrl.u32 %v2434_v22, 16  ;;  %v569_v34 = vshll.u32 %v2434_v22, 16  ;;  %v574_v15 = vshll.u32 %v336_v23, 16  ;;  %v689_v39 = vrot.slane %v2416_v58, 1 }
  0x64   : > { %1972 = vmatprep.subr.msk.bf16.mxu1 %vm890_vm2, %v2036_v6  ;;  %v690_v40 = vrot.slane %v318_v3, 1  ;;  %v469_v43 = vsel %vm337_vm1, %v464_v25, %v468_v31  ;;  %v716_v50 = vrot.slane %v2434_v22, 1  ;;  %v717_v52 = vrot.slane %v336_v23, 1  ;;  %v2039_v6 = vld [vmem:[%s2257_s18 + $0x18] sm:$0xff]  }
  0x65   : > { %719 = vrot.lane.b32.xlu1 %v661_v16, %s2096_s4  ;;  %v571_v42 = vrot.slane %v569_v34, 1  ;;  %v576_v44 = vrot.slane %v574_v15, 1 }
  0x66   : > { %596 = vrot.lane.b32.xlu0 %v457_v24, %s2097_s6  ;;  %v691_v49 = vsel %vm658_vm0, %v689_v39, %v690_v40  ;;  %v718_v54 = vsel %vm658_vm0, %v716_v50, %v717_v52 }
  0x67   : > { %v572_v45 = vor.u32 %v571_v42, %v567_v33 }
  0x69   : > { %737 = vrot.lane.b32.xlu1 %v688_v38, %s2096_s4  ;;  %v577_v53 = vsel %vm337_vm1, %v572_v45, %v576_v44 }
  0x6a   : > { %598 = vrot.lane.b32.xlu0 %v469_v43, %s2097_s6 }
  0x6d   : > { %739 = vrot.lane.b32.xlu1 %v691_v49, %s2096_s4 }
  0x6e   : > { %616 = vrot.lane.b32.xlu0 %v577_v53, %s2097_s6 }
  0x71   : > { %757 = vrot.lane.b32.xlu1 %v718_v54, %s2096_s4 }
  0x93   : > { %v744_v55 = vpop.permute.xlu0 %743 }
  0x95   : > { %v742_v56 = vpop.permute.xlu1 %741 }
  0x98   : > { %v722_v57 = vpop.permute.xlu0 %721 }
  0x99   : > { %v724_v60 = vpop.permute.xlu1 %723 }
  0x9c   : > { %v746_v61 = vpop.permute.xlu0 %745 }
  0x9d   : > { %v581_v62 = vpop.permute.xlu1 %580 }
  0x9e   : > { %v763_v63 = vsel %vm759_vm3, %v2208_v35, %v581_v62 }
  0x9f   : > { %v2460_v0 = vsel %vm800_vm4, %v763_v63, %v722_v57 }
  0xa0   : > { %1862 = vmatprep.mubr.msk.bf16.mxu0 %vm857_vm5, %v2460_v0  ;;  %v601_v1 = vpop.permute.xlu0 %600 }
  0xa1   : > { %v783_v2 = vsel %vm759_vm3, %v2198_v21, %v601_v1  ;;  %v583_v3 = vpop.permute.xlu1 %582 }
  0xa2   : > { %v765_v4 = vsel %vm759_vm3, %v2204_v30, %v583_v3  ;;  %v2469_v5 = vsel %vm800_vm4, %v783_v2, %v742_v56 }
  0xa3   : > { %v2473_v35 = vsel %vm800_vm4, %v765_v4, %v724_v60  ;;  %1878 = vmatprep.mubr.msk.bf16.mxu1 %vm857_vm5, %v2469_v5 }
  0xa4   : > { %1863 = vmatmul.mubr.msk.bf16.vlgmr.msra.gmra.mxu0 %vm857_vm5, %v2473_v35  ;;  %v603_v59 = vpop.permute.xlu0 %602 }
  0xa5   : > { %v785_v21 = vsel %vm759_vm3, %v2191_v14, %v603_v59  ;;  %1931 = vmatpush3.bf16.msra.mxu0 %v1250_v37 }
  0xa6   : > { %v2483_v30 = vsel %vm800_vm4, %v785_v21, %v744_v55  ;;  %1932 = vmatprep.subr.bf16.mxu0 %v2039_v6 }
  0xa7   : > { %v607_v12 = vpop.permute.xlu1 %606  ;;  %1879 = vmatmul.mubr.msk.bf16.vlgmr.msra.gmra.mxu1 %vm857_vm5, %v2483_v30 }
  0xa8   : > { %v605_v13 = vpop.permute.xlu0 %604  ;;  %1895 = vmatpush3.bf16.msra.mxu1 %v1069_v32  ;;  %v789_v18 = vsel %vm759_vm3, %v2246_v29, %v607_v12 }
  0xa9   : > { %v787_v16 = vsel %vm759_vm3, %v2220_v51, %v605_v13  ;;  %1896 = vmatprep.subr.bf16.mxu1 %v2038_v7  ;;  %1933 = vmatpush3.bf16.msra.mxu0 %v2039_v6 }
  0xaa   : > { %v2490_v17 = vsel %vm800_vm4, %v787_v16, %v746_v61 }
  0xab   : > { %v585_v14 = vpop.permute.xlu1 %584  ;;  %1882 = vmatprep.mubr.msk.bf16.mxu1 %vm857_vm5, %v2490_v17 }
  0xac   : > { %v748_v19 = vpop.permute.xlu0 %747  ;;  %1897 = vmatpush3.bf16.msra.mxu1 %v2038_v7  ;;  %v767_v51 = vsel %vm759_vm3, %v2260_v46, %v585_v14 }
  0xad   : > { %v2497_v20 = vsel %vm800_vm4, %v789_v18, %v748_v19 }
  0xaf   : > { %v587_v23 = vpop.permute.xlu1 %586  ;;  %1883 = vmatmul.mubr.msk.bf16.gmra.mxu1 %vm857_vm5, %v2497_v20 }
  0xb0   : > { %v726_v24 = vpop.permute.xlu0 %725  ;;  %v769_v29 = vsel %vm759_vm3, %v2284_v9, %v587_v23 }
  0xb1   : > { %v808_v25 = vsel %vm800_vm4, %v767_v51, %v726_v24 }
  0xb2   : > { %1866 = vmatprep.mubr.msk.bf16.mxu0 %vm857_vm5, %v808_v25 }
  0xb3   : > { %v728_v31 = vpop.permute.xlu1 %727 }
  0xb4   : > { %v810_v32 = vsel %vm800_vm4, %v769_v29, %v728_v31  ;;  %v609_v33 = vpop.permute.xlu0 %608 }
  0xb5   : > { %1867 = vmatmul.mubr.msk.bf16.gmra.mxu0 %vm857_vm5, %v810_v32  ;;  %v791_v15 = vsel %vm759_vm3, %v2294_v28, %v609_v33 }
  0xb7   : > { %v611_v34 = vpop.permute.xlu1 %610 }
  0xb8   : > { %v750_v37 = vpop.permute.xlu0 %749  ;;  %v793_v9 = vsel %vm759_vm3, %v2301_v41, %v611_v34 }
  0xb9   : > { %v2512_v46 = vsel %vm800_vm4, %v791_v15, %v750_v37 }
  0xba   : > { %1886 = vmatprep.mubr.msk.bf16.mxu1 %vm857_vm5, %v2512_v46 }
  0xbb   : > { %v589_v38 = vpop.permute.xlu1 %588 }
  0xbc   : > { %v752_v39 = vpop.permute.xlu0 %751  ;;  %v771_v28 = vsel %vm759_vm3, %v2319_v11, %v589_v38 }
  0xbd   : > { %v2519_v40 = vsel %vm800_vm4, %v793_v9, %v752_v39 }
  0xbe   : > { %1887 = vmatmul.mubr.msk.bf16.gmra.mxu1 %vm857_vm5, %v2519_v40 }
  0xbf   : > { %v591_v42 = vpop.permute.xlu1 %590 }
  0xc0   : > { %v730_v43 = vpop.permute.xlu0 %729  ;;  %v773_v45 = vsel %vm759_vm3, %v2330_v27, %v591_v42 }
  0xc1   : > { %v812_v44 = vsel %vm800_vm4, %v771_v28, %v730_v43 }
  0xc2   : > { %1870 = vmatprep.mubr.msk.bf16.mxu0 %vm857_vm5, %v812_v44 }
  0xc3   : > { %v732_v41 = vpop.permute.xlu1 %731 }
  0xc4   : > { %v814_v49 = vsel %vm800_vm4, %v773_v45, %v732_v41  ;;  %v613_v50 = vpop.permute.xlu0 %612 }
  0xc5   : > { %1871 = vmatmul.mubr.msk.bf16.gmra.mxu0 %vm857_vm5, %v814_v49  ;;  %v795_v53 = vsel %vm759_vm3, %v2339_v47, %v613_v50 }
  0xc7   : > { %v615_v52 = vpop.permute.xlu1 %614 }
  0xc8   : > { %v754_v54 = vpop.permute.xlu0 %753  ;;  %v797_v56 = vsel %vm759_vm3, %v2354_v8, %v615_v52 }
  0xc9   : > { %v836_v11 = vsel %vm800_vm4, %v795_v53, %v754_v54 }
  0xca   : > { %1890 = vmatprep.mubr.msk.bf16.mxu1 %vm857_vm5, %v836_v11 }
  0xcb   : > { %v593_v55 = vpop.permute.xlu1 %592 }
  0xcc   : > { %v756_v27 = vpop.permute.xlu0 %755  ;;  %v775_v61 = vsel %vm759_vm3, %v2364_v26, %v593_v55 }
  0xcd   : > { %v838_v57 = vsel %vm800_vm4, %v797_v56, %v756_v27 }
  0xce   : > { %1891 = vmatmul.mubr.msk.bf16.gmra.mxu1 %vm857_vm5, %v838_v57 }
  0xcf   : > { %v595_v60 = vpop.permute.xlu1 %594 }
  0xd0   : > { %v734_v62 = vpop.permute.xlu0 %733  ;;  %v777_v63 = vsel %vm759_vm3, %v2375_v48, %v595_v60 }
  0xd1   : > { %v816_v47 = vsel %vm800_vm4, %v775_v61, %v734_v62 }
  0xd2   : > { %1874 = vmatprep.mubr.msk.bf16.mxu0 %vm857_vm5, %v816_v47 }
  0xd3   : > { %v736_v1 = vpop.permute.xlu1 %735 }
  0xd4   : > { %v818_v8 = vsel %vm800_vm4, %v777_v63, %v736_v1  ;;  %v579_v2 = vpop.permute.xlu0 %578 }
  0xd5   : > { %1875 = vmatmul.mubr.msk.bf16.gmra.mxu0 %vm857_vm5, %v818_v8  ;;  %v761_v3 = vsel %vm759_vm3, %v2392_v10, %v579_v2 }
  0xd6   : > { %1934 = vmatprep.mubr.msk.bf16.mxu0 %vm857_vm5, %v2473_v35 }
  0xd7   : > { %v720_v26 = vpop.permute.xlu1 %719 }
  0xd8   : > { %v802_v4 = vsel %vm800_vm4, %v761_v3, %v720_v26  ;;  %v597_v48 = vpop.permute.xlu0 %596 }
  0xd9   : > { %1898 = vmatprep.mubr.msk.bf16.mxu1 %vm857_vm5, %v802_v4  ;;  %v779_v59 = vsel %vm759_vm3, %v2402_v36, %v597_v48 }
  0xda   : > { %1899 = vmatmul.mubr.msk.bf16.vlgmr.msra.gmra.mxu1 %vm857_vm5, %v2460_v0 }
  0xdb   : > { %1902 = vmatprep.mubr.msk.bf16.mxu1 %vm857_vm5, %v2473_v35  ;;  %v738_v10 = vpop.permute.xlu1 %737 }
  0xdc   : > { %v599_v0 = vpop.permute.xlu0 %598  ;;  %v820_v7 = vsel %vm800_vm4, %v779_v59, %v738_v10 }
  0xdd   : > { %1935 = vmatmul.mubr.msk.bf16.vlgmr.msra.gmra.mxu0 %vm857_vm5, %v808_v25  ;;  %v781_v6 = vsel %vm759_vm3, %v2416_v58, %v599_v0 }
  0xde   : > { %1938 = vmatprep.mubr.msk.bf16.mxu0 %vm857_vm5, %v810_v32 }
  0xdf   : > { %v740_v35 = vpop.permute.xlu1 %739 }
  0xe0   : > { %v822_v21 = vsel %vm800_vm4, %v781_v6, %v740_v35  ;;  %v617_v36 = vpop.permute.xlu0 %616 }
  0xe1   : > { %v799_v58 = vsel %vm759_vm3, %v2434_v22, %v617_v36 }
  0xe2   : > { %1903 = vmatmul.mubr.msk.bf16.gmra.mxu1 %vm857_vm5, %v808_v25 }
  0xe3   : > { %1906 = vmatprep.mubr.msk.bf16.mxu1 %vm857_vm5, %v810_v32 }
  0xe5   : > { %1939 = vmatmul.mubr.msk.bf16.gmra.mxu0 %vm857_vm5, %v812_v44 }
  0xe6   : > { %1942 = vmatprep.mubr.msk.bf16.mxu0 %vm857_vm5, %v814_v49 }
  0xea   : > { %1907 = vmatmul.mubr.msk.bf16.gmra.mxu1 %vm857_vm5, %v812_v44 }
  0xeb   : > { %1910 = vmatprep.mubr.msk.bf16.mxu1 %vm857_vm5, %v814_v49 }
  0xed   : > { %1943 = vmatmul.mubr.msk.bf16.gmra.mxu0 %vm857_vm5, %v816_v47 }
  0xee   : > { %1946 = vmatprep.mubr.msk.bf16.mxu0 %vm857_vm5, %v818_v8 }
  0xf2   : > { %1911 = vmatmul.mubr.msk.bf16.gmra.mxu1 %vm857_vm5, %v816_v47 }
  0xf3   : > { %1914 = vmatprep.mubr.msk.bf16.mxu1 %vm857_vm5, %v822_v21 }
  0xf5   : > { %1947 = vmatmul.mubr.msk.bf16.gmra.mxu0 %vm857_vm5, %v820_v7 }
  0xf6   : > { %1950 = vmatprep.mubr.msk.bf16.mxu0 %vm857_vm5, %v2483_v30 }
  0xfa   : > { %1915 = vmatmul.mubr.msk.bf16.gmra.mxu1 %vm857_vm5, %v2469_v5  ;;  %v758_v5 = vpop.permute.xlu1 %757 }
  0xfb   : > { %1918 = vmatprep.mubr.msk.bf16.mxu1 %vm857_vm5, %v2483_v30  ;;  %v840_v30 = vsel %vm800_vm4, %v799_v58, %v758_v5 }
  0xfd   : > { %1951 = vmatmul.mubr.msk.bf16.gmra.mxu0 %vm857_vm5, %v2490_v17 }
  0xfe   : > { %1954 = vmatprep.mubr.msk.bf16.mxu0 %vm857_vm5, %v2497_v20 }
 0x102   : > { %1919 = vmatmul.mubr.msk.bf16.gmra.mxu1 %vm857_vm5, %v2490_v17 }
 0x103   : > { %1922 = vmatprep.mubr.msk.bf16.mxu1 %vm857_vm5, %v2497_v20 }
 0x105   : > { %1955 = vmatmul.mubr.msk.bf16.gmra.mxu0 %vm857_vm5, %v2512_v46 }
 0x106   : > { %1958 = vmatprep.mubr.msk.bf16.mxu0 %vm857_vm5, %v2519_v40 }
 0x10a   : > { %1923 = vmatmul.mubr.msk.bf16.gmra.mxu1 %vm857_vm5, %v2512_v46 }
 0x10b   : > { %1926 = vmatprep.mubr.msk.bf16.mxu1 %vm857_vm5, %v2519_v40 }
 0x10d   : > { %1959 = vmatmul.mubr.msk.bf16.gmra.mxu0 %vm857_vm5, %v836_v11 }
 0x10e   : > { %1962 = vmatprep.mubr.msk.bf16.mxu0 %vm857_vm5, %v838_v57 }
 0x112   : > { %1927 = vmatmul.mubr.msk.bf16.gmra.mxu1 %vm857_vm5, %v836_v11 }
 0x115   : > { %1963 = vmatmul.mubr.msk.bf16.gmra.mxu0 %vm857_vm5, %v840_v30 }
 0x164   : > { %v1864_v16 = vpop.f32.mrf.mxu0 }
 0x166   : > { %v928_v18 = vpop.f32.mrf.mxu0 }
 0x167   : > { %v2605_v12 = vpop.f32.mrf.mxu1 }
 0x168   : > { %v1865_v22 = vpop.f32.mrf.mxu0 }
 0x169   : > { %v2607_v13 = vpop.f32.mrf.mxu1 }
 0x16a   : > { %v931_v23 = vpop.f32.mrf.mxu0 }
 0x16b   : > { %v2609_v17 = vpop.f32.mrf.mxu1 }
 0x16d   : > { %v2611_v14 = vpop.f32.mrf.mxu1 }
 0x16f   : > { %v2613_v19 = vpop.f32.mrf.mxu1 }
 0x171   : > { %v2615_v20 = vpop.f32.mrf.mxu1 }
 0x173   : > { %v2617_v24 = vpop.f32.mrf.mxu1 }
 0x175   : > { %v1868_v51 = vpop.f32.mrf.mxu0  ;;  %v2619_v29 = vpop.f32.mrf.mxu1 }
 0x177   : > { %v944_v25 = vpop.f32.mrf.mxu0 }
 0x179   : > { %v1869_v32 = vpop.f32.mrf.mxu0 }
 0x17b   : > { %v947_v34 = vpop.f32.mrf.mxu0 }
 0x17e   : > { %v2621_v31 = vpop.f32.mrf.mxu1 }
 0x180   : > { %v2623_v33 = vpop.f32.mrf.mxu1 }
 0x182   : > { %v2625_v37 = vpop.f32.mrf.mxu1 }
 0x184   : > { %v2627_v38 = vpop.f32.mrf.mxu1 }
 0x185   : > { %v1872_v15 = vpop.f32.mrf.mxu0 }
 0x187   : > { %v960_v46 = vpop.f32.mrf.mxu0 }
 0x189   : > { %v1873_v39 = vpop.f32.mrf.mxu0 }
 0x18b   : > { %v963_v42 = vpop.f32.mrf.mxu0 }
 0x18e   : > { %v2629_v9 = vpop.f32.mrf.mxu1 }
 0x190   : > { %v2631_v40 = vpop.f32.mrf.mxu1 }
 0x192   : > { %v2633_v28 = vpop.f32.mrf.mxu1 }
 0x194   : > { %v2640_v45 = vpop.f32.mrf.mxu1 }
 0x195   : > { %v2635_v43 = vpop.f32.mrf.mxu0 }
 0x197   : > { %v2637_v44 = vpop.f32.mrf.mxu0 }
 0x199   : > { %v2642_v41 = vpop.f32.mrf.mxu0 }
 0x19a   : > { %v1900_v49 = vpop.f32.mrf.mxu1 }
 0x19b   : > { %v1114_v50 = vadd.f32 %v1900_v49, %v1864_v16  ;;  %v2644_v52 = vpop.f32.mrf.mxu0 }
 0x19c   : > { %v1105_v53 = vpop.f32.mrf.mxu1 }
 0x19d   : > { %v1106_v54 = vadd.f32 %v1105_v53, %v928_v18  ;;  %v1936_v11 = vpop.f32.mrf.mxu0 }
 0x19e   : > { %v1415_v55 = vadd.f32 %v1936_v11, %v1114_v50  ;;  %v1901_v56 = vpop.f32.mrf.mxu1 }
 0x19f   : > { %v1117_v27 = vadd.f32 %v1901_v56, %v1865_v22  ;;  %v1286_v57 = vpop.f32.mrf.mxu0 }
 0x1a0   : > { %1447 = vst.msk [vmem:[%s2646_s22 + $0x10] sm:$0xff] %vm759_vm3, %v1415_v55  ;;  %v1413_v60 = vadd.f32 %v1286_v57, %v1106_v54  ;;  %v1108_v61 = vpop.f32.mrf.mxu1 }
 0x1a1   : > { %v1109_v62 = vadd.f32 %v1108_v61, %v931_v23  ;;  %v1937_v47 = vpop.f32.mrf.mxu0 }
 0x1a2   : > { %1445 = vst.msk [vmem:[%s2646_s22] sm:$0xff] %vm759_vm3, %v1413_v60  ;;  %v1416_v63 = vadd.f32 %v1937_v47, %v1117_v27  ;;  %v1904_v1 = vpop.f32.mrf.mxu1 }
 0x1a3   : > { %v1130_v8 = vadd.f32 %v1904_v1, %v1868_v51  ;;  %v1289_v2 = vpop.f32.mrf.mxu0 }
 0x1a4   : > { %1448 = vst.msk [vmem:[%s2646_s22 + $0x18] sm:$0xff] %vm759_vm3, %v1416_v63  ;;  %v1414_v3 = vadd.f32 %v1289_v2, %v1109_v62  ;;  %v1121_v26 = vpop.f32.mrf.mxu1 }
 0x1a5   : > { %v1122_v4 = vadd.f32 %v1121_v26, %v944_v25  ;;  %v1940_v48 = vpop.f32.mrf.mxu0 }
 0x1a6   : > { %1446 = vst.msk [vmem:[%s2646_s22 + $0x8] sm:$0xff] %vm759_vm3, %v1414_v3  ;;  %v1419_v10 = vadd.f32 %v1940_v48, %v1130_v8  ;;  %v1905_v0 = vpop.f32.mrf.mxu1 }
 0x1a7   : > { %v1133_v6 = vadd.f32 %v1905_v0, %v1869_v32  ;;  %v1302_v35 = vpop.f32.mrf.mxu0 }
 0x1a8   : > { %1451 = vst.msk [vmem:[%s2646_s22 + $0x30] sm:$0xff] %vm759_vm3, %v1419_v10  ;;  %v1417_v59 = vadd.f32 %v1302_v35, %v1122_v4  ;;  %v1124_v21 = vpop.f32.mrf.mxu1 }
 0x1a9   : > { %v1125_v7 = vadd.f32 %v1124_v21, %v947_v34  ;;  %v1941_v36 = vpop.f32.mrf.mxu0 }
 0x1aa   : > { %1449 = vst.msk [vmem:[%s2646_s22 + $0x20] sm:$0xff] %vm759_vm3, %v1417_v59  ;;  %v1420_v58 = vadd.f32 %v1941_v36, %v1133_v6  ;;  %v1908_v5 = vpop.f32.mrf.mxu1 }
 0x1ab   : > { %v1146_v30 = vadd.f32 %v1908_v5, %v1872_v15  ;;  %v1305_v16 = vpop.f32.mrf.mxu0 }
 0x1ac   : > { %1452 = vst.msk [vmem:[%s2646_s22 + $0x38] sm:$0xff] %vm759_vm3, %v1420_v58  ;;  %v1418_v18 = vadd.f32 %v1305_v16, %v1125_v7  ;;  %v1137_v22 = vpop.f32.mrf.mxu1 }
 0x1ad   : > { %v1138_v23 = vadd.f32 %v1137_v22, %v960_v46  ;;  %v1944_v51 = vpop.f32.mrf.mxu0 }
 0x1ae   : > { %1450 = vst.msk [vmem:[%s2646_s22 + $0x28] sm:$0xff] %vm759_vm3, %v1418_v18  ;;  %v1423_v25 = vadd.f32 %v1944_v51, %v1146_v30  ;;  %v1909_v32 = vpop.f32.mrf.mxu1 }
 0x1af   : > { %v1149_v34 = vadd.f32 %v1909_v32, %v1873_v39  ;;  %v1318_v49 = vpop.f32.mrf.mxu0 }
 0x1b0   : > { %1455 = vst.msk [vmem:[%s2646_s22 + $0x50] sm:$0xff] %vm759_vm3, %v1423_v25  ;;  %v1421_v50 = vadd.f32 %v1318_v49, %v1138_v23  ;;  %v1140_v15 = vpop.f32.mrf.mxu1 }
 0x1b1   : > { %v1141_v53 = vadd.f32 %v1140_v15, %v963_v42  ;;  %v1945_v54 = vpop.f32.mrf.mxu0 }
 0x1b2   : > { %1453 = vst.msk [vmem:[%s2646_s22 + $0x40] sm:$0xff] %vm759_vm3, %v1421_v50  ;;  %v1424_v11 = vadd.f32 %v1945_v54, %v1149_v34  ;;  %v1912_v46 = vpop.f32.mrf.mxu1 }
 0x1b3   : > { %v1162_v55 = vadd.f32 %v1912_v46, %v2635_v43  ;;  %v1321_v56 = vpop.f32.mrf.mxu0 }
 0x1b4   : > { %1456 = vst.msk [vmem:[%s2646_s22 + $0x58] sm:$0xff] %vm759_vm3, %v1424_v11  ;;  %v1422_v39 = vadd.f32 %v1321_v56, %v1141_v53  ;;  %v1153_v27 = vpop.f32.mrf.mxu1 }
 0x1b5   : > { %v1154_v57 = vadd.f32 %v1153_v27, %v2637_v44  ;;  %v1948_v60 = vpop.f32.mrf.mxu0 }
 0x1b6   : > { %1454 = vst.msk [vmem:[%s2646_s22 + $0x48] sm:$0xff] %vm759_vm3, %v1422_v39  ;;  %v1427_v42 = vadd.f32 %v1948_v60, %v1162_v55  ;;  %v1913_v61 = vpop.f32.mrf.mxu1 }
 0x1b7   : > { %v1165_v62 = vadd.f32 %v1913_v61, %v2642_v41  ;;  %v1334_v47 = vpop.f32.mrf.mxu0 }
 0x1b8   : > { %1459 = vst.msk [vmem:[%s2646_s22 + $0x70] sm:$0xff] %vm759_vm3, %v1427_v42  ;;  %v1425_v43 = vadd.f32 %v1334_v47, %v1154_v57  ;;  %v1156_v63 = vpop.f32.mrf.mxu1 }
 0x1b9   : > { %v1157_v1 = vadd.f32 %v1156_v63, %v2644_v52  ;;  %v1949_v8 = vpop.f32.mrf.mxu0 }
 0x1ba   : > { %1457 = vst.msk [vmem:[%s2646_s22 + $0x60] sm:$0xff] %vm759_vm3, %v1425_v43  ;;  %v1428_v44 = vadd.f32 %v1949_v8, %v1165_v62  ;;  %v1916_v2 = vpop.f32.mrf.mxu1 }
 0x1bb   : > { %v1178_v3 = vadd.f32 %v1916_v2, %v2605_v12  ;;  %v1337_v26 = vpop.f32.mrf.mxu0 }
 0x1bc   : > { %1460 = vst.msk [vmem:[%s2646_s22 + $0x78] sm:$0xff] %vm759_vm3, %v1428_v44  ;;  %v1426_v41 = vadd.f32 %v1337_v26, %v1157_v1  ;;  %v1169_v4 = vpop.f32.mrf.mxu1 }
 0x1bd   : > { %v1170_v48 = vadd.f32 %v1169_v4, %v2607_v13  ;;  %v1952_v10 = vpop.f32.mrf.mxu0  ;;  %v1584_v4 = vld [vmem:[%s2646_s22 + $0x10] sm:$0xff] (%p2159_p5) }
 0x1be   : > { %1458 = vst.msk [vmem:[%s2646_s22 + $0x68] sm:$0xff] %vm759_vm3, %v1426_v41  ;;  %v1431_v52 = vadd.f32 %v1952_v10, %v1178_v3  ;;  %v1917_v0 = vpop.f32.mrf.mxu1  ;;  %v1588_v10 = vld [vmem:[%s2646_s22 + $0x20] sm:$0xff] (%p2159_p5)  ;;  %1585 = vst [vmem:[%s2748_s28 + $0x10] sm:$0xff] (%p2159_p5), %v1584_v4 }
 0x1bf   : > { %v1181_v6 = vadd.f32 %v1917_v0, %v2609_v17  ;;  %v1350_v35 = vpop.f32.mrf.mxu0  ;;  %v1592_v0 = vld [vmem:[%s2646_s22 + $0x30] sm:$0xff] (%p2159_p5)  ;;  %1589 = vst [vmem:[%s2748_s28 + $0x20] sm:$0xff] (%p2159_p5), %v1588_v10 }
 0x1c0   : > { %1463 = vst.msk [vmem:[%s2646_s22 + $0x90] sm:$0xff] %vm759_vm3, %v1431_v52  ;;  %v1429_v12 = vadd.f32 %v1350_v35, %v1170_v48  ;;  %v1172_v59 = vpop.f32.mrf.mxu1  ;;  %v1586_v48 = vld [vmem:[%s2646_s22 + $0x18] sm:$0xff] (%p2159_p5)  ;;  %v1590_v52 = vld [vmem:[%s2646_s22 + $0x28] sm:$0xff] (%p2159_p5)  ;;  %v1596_v35 = vld [vmem:[%s2646_s22 + $0x40] sm:$0xff] (%p2159_p5) }
 0x1c1   : > { %v1173_v21 = vadd.f32 %v1172_v59, %v2611_v14  ;;  %v1953_v7 = vpop.f32.mrf.mxu0  ;;  %v1600_v59 = vld [vmem:[%s2646_s22 + $0x50] sm:$0xff] (%p2159_p5)  ;;  %1587 = vst [vmem:[%s2748_s28 + $0x18] sm:$0xff] (%p2159_p5), %v1586_v48  ;;  %1591 = vst [vmem:[%s2748_s28 + $0x28] sm:$0xff] (%p2159_p5), %v1590_v52 }
 0x1c2   : > { %1461 = vst.msk [vmem:[%s2646_s22 + $0x80] sm:$0xff] %vm759_vm3, %v1429_v12  ;;  %v1432_v13 = vadd.f32 %v1953_v7, %v1181_v6  ;;  %v1920_v36 = vpop.f32.mrf.mxu1  ;;  %v1594_v6 = vld [vmem:[%s2646_s22 + $0x38] sm:$0xff] (%p2159_p5)  ;;  %v1598_v12 = vld [vmem:[%s2646_s22 + $0x48] sm:$0xff] (%p2159_p5)  ;;  %1593 = vst [vmem:[%s2748_s28 + $0x30] sm:$0xff] (%p2159_p5), %v1592_v0 }
 0x1c3   : > { %v1194_v58 = vadd.f32 %v1920_v36, %v2613_v19  ;;  %v1353_v5 = vpop.f32.mrf.mxu0  ;;  %1595 = vst [vmem:[%s2748_s28 + $0x38] sm:$0xff] (%p2159_p5), %v1594_v6  ;;  %1597 = vst [vmem:[%s2748_s28 + $0x40] sm:$0xff] (%p2159_p5), %v1596_v35  ;;  %v1604_v7 = vld [vmem:[%s2646_s22 + $0x60] sm:$0xff] (%p2159_p5)  ;;  %v1608_v36 = vld [vmem:[%s2646_s22 + $0x70] sm:$0xff] (%p2159_p5) }
 0x1c4   : > { %1464 = vst.msk [vmem:[%s2646_s22 + $0x98] sm:$0xff] %vm759_vm3, %v1432_v13  ;;  %v1430_v17 = vadd.f32 %v1353_v5, %v1173_v21  ;;  %v1185_v30 = vpop.f32.mrf.mxu1  ;;  %v1602_v21 = vld [vmem:[%s2646_s22 + $0x58] sm:$0xff] (%p2159_p5)  ;;  %1599 = vst [vmem:[%s2748_s28 + $0x48] sm:$0xff] (%p2159_p5), %v1598_v12 }
 0x1c5   : > { %v1186_v16 = vadd.f32 %v1185_v30, %v2615_v20  ;;  %v1956_v18 = vpop.f32.mrf.mxu0  ;;  %1601 = vst [vmem:[%s2748_s28 + $0x50] sm:$0xff] (%p2159_p5), %v1600_v59  ;;  %1603 = vst [vmem:[%s2748_s28 + $0x58] sm:$0xff] (%p2159_p5), %v1602_v21  ;;  %v1606_v13 = vld [vmem:[%s2646_s22 + $0x68] sm:$0xff] (%p2159_p5) }
 0x1c6   : > { %1462 = vst.msk [vmem:[%s2646_s22 + $0x88] sm:$0xff] %vm759_vm3, %v1430_v17  ;;  %v1435_v14 = vadd.f32 %v1956_v18, %v1194_v58  ;;  %v1921_v22 = vpop.f32.mrf.mxu1  ;;  %1605 = vst [vmem:[%s2748_s28 + $0x60] sm:$0xff] (%p2159_p5), %v1604_v7  ;;  %v1610_v58 = vld [vmem:[%s2646_s22 + $0x78] sm:$0xff] (%p2159_p5) }
 0x1c7   : > { %v1197_v23 = vadd.f32 %v1921_v22, %v2617_v24  ;;  %v1366_v51 = vpop.f32.mrf.mxu0  ;;  %1607 = vst [vmem:[%s2748_s28 + $0x68] sm:$0xff] (%p2159_p5), %v1606_v13  ;;  %1609 = vst [vmem:[%s2748_s28 + $0x70] sm:$0xff] (%p2159_p5), %v1608_v36  ;;  %v1616_v30 = vld [vmem:[%s2646_s22 + $0x90] sm:$0xff] (%p2159_p5) }
 0x1c8   : > { %1467 = vst.msk [vmem:[%s2646_s22 + $0xb0] sm:$0xff] %vm759_vm3, %v1435_v14  ;;  %v1433_v19 = vadd.f32 %v1366_v51, %v1186_v16  ;;  %v1188_v25 = vpop.f32.mrf.mxu1  ;;  %1611 = vst [vmem:[%s2748_s28 + $0x78] sm:$0xff] (%p2159_p5), %v1610_v58 }
 0x1c9   : > { %v1189_v32 = vadd.f32 %v1188_v25, %v2619_v29  ;;  %v1957_v34 = vpop.f32.mrf.mxu0  ;;  %v1612_v5 = vld [vmem:[%s2646_s22 + $0x80] sm:$0xff] (%p2159_p5)  ;;  %1617 = vst [vmem:[%s2748_s28 + $0x110] sm:$0xff] (%p2159_p5), %v1616_v30 }
 0x1ca   : > { %1465 = vst.msk [vmem:[%s2646_s22 + $0xa0] sm:$0xff] %vm759_vm3, %v1433_v19  ;;  %v1436_v20 = vadd.f32 %v1957_v34, %v1197_v23  ;;  %v1924_v49 = vpop.f32.mrf.mxu1  ;;  %1613 = vst [vmem:[%s2748_s28 + $0x100] sm:$0xff] (%p2159_p5), %v1612_v5 }
 0x1cb   : > { %v1210_v50 = vadd.f32 %v1924_v49, %v2621_v31  ;;  %v1369_v15 = vpop.f32.mrf.mxu0  ;;  %v1618_v16 = vld [vmem:[%s2646_s22 + $0x98] sm:$0xff] (%p2159_p5) }
 0x1cc   : > { %1468 = vst.msk [vmem:[%s2646_s22 + $0xb8] sm:$0xff] %vm759_vm3, %v1436_v20  ;;  %v1434_v24 = vadd.f32 %v1369_v15, %v1189_v32  ;;  %v1201_v53 = vpop.f32.mrf.mxu1  ;;  %1619 = vst [vmem:[%s2748_s28 + $0x118] sm:$0xff] (%p2159_p5), %v1618_v16 }
 0x1cd   : > { %v1202_v54 = vadd.f32 %v1201_v53, %v2623_v33  ;;  %v1960_v11 = vpop.f32.mrf.mxu0  ;;  %v1614_v17 = vld [vmem:[%s2646_s22 + $0x88] sm:$0xff] (%p2159_p5) }
 0x1ce   : > { %1466 = vst.msk [vmem:[%s2646_s22 + $0xa8] sm:$0xff] %vm759_vm3, %v1434_v24  ;;  %v1439_v29 = vadd.f32 %v1960_v11, %v1210_v50  ;;  %v1925_v46 = vpop.f32.mrf.mxu1  ;;  %1615 = vst [vmem:[%s2748_s28 + $0x108] sm:$0xff] (%p2159_p5), %v1614_v17 }
 0x1cf   : > { %v1213_v55 = vadd.f32 %v1925_v46, %v2625_v37  ;;  %v1382_v56 = vpop.f32.mrf.mxu0  ;;  %v1624_v22 = vld [vmem:[%s2646_s22 + $0xb0] sm:$0xff] (%p2159_p5) }
 0x1d0   : > { %1471 = vst.msk [vmem:[%s2646_s22 + $0xd0] sm:$0xff] %vm759_vm3, %v1439_v29  ;;  %v1437_v31 = vadd.f32 %v1382_v56, %v1202_v54  ;;  %v1204_v39 = vpop.f32.mrf.mxu1  ;;  %1625 = vst [vmem:[%s2748_s28 + $0x130] sm:$0xff] (%p2159_p5), %v1624_v22 }
 0x1d1   : > { %v1205_v27 = vadd.f32 %v1204_v39, %v2627_v38  ;;  %v1961_v57 = vpop.f32.mrf.mxu0  ;;  %v1620_v18 = vld [vmem:[%s2646_s22 + $0xa0] sm:$0xff] (%p2159_p5) }
 0x1d2   : > { %1469 = vst.msk [vmem:[%s2646_s22 + $0xc0] sm:$0xff] %vm759_vm3, %v1437_v31  ;;  %v1440_v33 = vadd.f32 %v1961_v57, %v1213_v55  ;;  %v1928_v60 = vpop.f32.mrf.mxu1  ;;  %1621 = vst [vmem:[%s2748_s28 + $0x120] sm:$0xff] (%p2159_p5), %v1620_v18 }
 0x1d3   : > { %v1226_v42 = vadd.f32 %v1928_v60, %v2629_v9  ;;  %v1385_v61 = vpop.f32.mrf.mxu0  ;;  %v1626_v23 = vld [vmem:[%s2646_s22 + $0xb8] sm:$0xff] (%p2159_p5) }
 0x1d4   : > { %1472 = vst.msk [vmem:[%s2646_s22 + $0xd8] sm:$0xff] %vm759_vm3, %v1440_v33  ;;  %v1438_v37 = vadd.f32 %v1385_v61, %v1205_v27  ;;  %v1217_v62 = vpop.f32.mrf.mxu1  ;;  %1627 = vst [vmem:[%s2748_s28 + $0x138] sm:$0xff] (%p2159_p5), %v1626_v23 }
 0x1d5   : > { %v1218_v47 = vadd.f32 %v1217_v62, %v2631_v40  ;;  %v1964_v43 = vpop.f32.mrf.mxu0  ;;  %v1622_v14 = vld [vmem:[%s2646_s22 + $0xa8] sm:$0xff] (%p2159_p5) }
 0x1d6   : > { %1470 = vst.msk [vmem:[%s2646_s22 + $0xc8] sm:$0xff] %vm759_vm3, %v1438_v37  ;;  %v1443_v38 = vadd.f32 %v1964_v43, %v1226_v42  ;;  %v1929_v63 = vpop.f32.mrf.mxu1  ;;  %1623 = vst [vmem:[%s2748_s28 + $0x128] sm:$0xff] (%p2159_p5), %v1622_v14 }
 0x1d7   : > { %v1229_v1 = vadd.f32 %v1929_v63, %v2633_v28  ;;  %v1398_v8 = vpop.f32.mrf.mxu0  ;;  %v1580_v28 = vld [vmem:[%s2646_s22] sm:$0xff] (%p2159_p5)  ;;  %v1632_v25 = vld [vmem:[%s2646_s22 + $0xd0] sm:$0xff] (%p2159_p5) }
 0x1d8   : > { %1475 = vst.msk [vmem:[%s2646_s22 + $0xf0] sm:$0xff] %vm759_vm3, %v1443_v38  ;;  %v1441_v9 = vadd.f32 %v1398_v8, %v1218_v47  ;;  %v1220_v44 = vpop.f32.mrf.mxu1  ;;  %1581 = vst [vmem:[%s2748_s28] sm:$0xff] (%p2159_p5), %v1580_v28 }
 0x1d9   : > { %v1221_v2 = vadd.f32 %v1220_v44, %v2640_v45  ;;  %v1965_v3 = vpop.f32.mrf.mxu0  ;;  %v1582_v45 = vld [vmem:[%s2646_s22 + $0x8] sm:$0xff] (%p2159_p5)  ;;  %v1628_v51 = vld [vmem:[%s2646_s22 + $0xc0] sm:$0xff] (%p2159_p5)  ;;  %1633 = vst [vmem:[%s2748_s28 + $0x150] sm:$0xff] (%p2159_p5), %v1632_v25 }
 0x1da   : > { %1473 = vst.msk [vmem:[%s2646_s22 + $0xe0] sm:$0xff] %vm759_vm3, %v1441_v9  ;;  %v1444_v26 = vadd.f32 %v1965_v3, %v1229_v1  ;;  %1483 = sbr.rel (!%p2159_p5) target bundleno = 487 (0x1e7), region = 32  ;;  %1583 = vst [vmem:[%s2748_s28 + $0x8] sm:$0xff] (%p2159_p5), %v1582_v45 }
 0x1db   : > { %v1401_v40 = vpop.f32.mrf.mxu0  ;;  %1629 = vst [vmem:[%s2748_s28 + $0x140] sm:$0xff] (%p2159_p5), %v1628_v51  ;;  %v1634_v32 = vld [vmem:[%s2646_s22 + $0xd8] sm:$0xff] (%p2159_p5) }
 0x1dc   : > { %1476 = vst.msk [vmem:[%s2646_s22 + $0xf8] sm:$0xff] %vm759_vm3, %v1444_v26  ;;  %v1442_v41 = vadd.f32 %v1401_v40, %v1221_v2  ;;  %1635 = vst [vmem:[%s2748_s28 + $0x158] sm:$0xff] (%p2159_p5), %v1634_v32 }
 0x1dd   : > { %v1630_v19 = vld [vmem:[%s2646_s22 + $0xc8] sm:$0xff] (%p2159_p5) }
 0x1de   : > { %1474 = vst.msk [vmem:[%s2646_s22 + $0xe8] sm:$0xff] %vm759_vm3, %v1442_v41  ;;  %1631 = vst [vmem:[%s2748_s28 + $0x148] sm:$0xff] (%p2159_p5), %v1630_v19 }
 0x1df   : > { %v1640_v49 = vld [vmem:[%s2646_s22 + $0xf0] sm:$0xff] }
 0x1e0   : > { %1641 = vst [vmem:[%s2748_s28 + $0x170] sm:$0xff] %v1640_v49 }
 0x1e1   : > { %v1636_v34 = vld [vmem:[%s2646_s22 + $0xe0] sm:$0xff] }
 0x1e2   : > { %1637 = vst [vmem:[%s2748_s28 + $0x160] sm:$0xff] %v1636_v34 }
 0x1e3   : > { %v1642_v50 = vld [vmem:[%s2646_s22 + $0xf8] sm:$0xff] }
 0x1e4   : > { %1643 = vst [vmem:[%s2748_s28 + $0x178] sm:$0xff] %v1642_v50 }
 0x1e5   : > { %v1638_v20 = vld [vmem:[%s2646_s22 + $0xe8] sm:$0xff] }
 0x1e6   : > { %1639 = vst [vmem:[%s2748_s28 + $0x168] sm:$0xff] %v1638_v20 }
 0x1e7 PF: > { %s12_s15 = sadd.s32 1, %s2094_s15   ;;  %s2830_s9 = smov %s2074_s10 }
 0x1e8   : > { %p9_p10 = scmp.ge.s32.totalorder %s12_s15, 10   ;;  %s2831_s10 = smov %s2170_s24 }
 0x1e9   : > { %s2832_s11 = smov %s2086_s13  ;;  %s2833_s12 = smov %s2090_s14 }
 0x1ea   : > { %s2834_s13 = smov %s2837_s16  ;;  %s2835_s14 = smov %s2841_s17 }
 0x1eb   :  { %11 = sbr.rel (!%p9_p10) target bundleno = 4 (0x4), region = 102 }

</bundles_post_ra>
